<compile_context>
chip_gen: v7x
topology: tpu7x:2x2x1
jax: 0.10.0
libtpu: 0.0.40
codegen_flags: <defaults>
</compile_context>

<pallas_src>
import jax
import jax.numpy as jnp
from jax import lax
from jax.experimental import pallas as pl
from jax.experimental.pallas import tpu as pltpu


# Conservative budgets that fit every generation (v7x: 64 MiB physical VMEM,
# 32 MiB scoped default; v5e/v6e: 128 MiB).  Both are far below the scoped
# default even when double-buffered.
_VMEM_TABLE_BUDGET = 4 << 20   # table kept resident in VMEM if <= 4 MiB
_VMEM_TILE_BUDGET = 4 << 20    # per-step output tile <= 4 MiB
_STATIC_UNROLL_MAX = 64        # static Python unroll up to this many rows


def _clamp_row(row, num_rows):
    # PyTorch nn.Embedding treats OOB indices as invalid input; clamping here
    # is cheap insurance against OOB DMAs / stale-VMEM reads on TPU.
    return jnp.minimum(jnp.maximum(row, 0), num_rows - 1)


def _vmem_lookup_kernel(idx_ref, table_ref, out_ref):
    """Fast path: table resident in VMEM; out_ref[b,:] = table[idx[i*tb+b],:]."""
    i = pl.program_id(0)
    tb = out_ref.shape[0]
    num_rows = table_ref.shape[0]
    base = i * tb

    def copy_row(b):
        row = _clamp_row(idx_ref[base + b], num_rows)   # scalar SMEM read
        out_ref[pl.ds(b, 1), :] = table_ref[pl.ds(row, 1), :]

    if tb <= _STATIC_UNROLL_MAX:
        for b in range(tb):
            copy_row(b)
    else:
        def body(b, carry):
            copy_row(b)
            return carry
        lax.fori_loop(0, tb, body, 0, unroll=8)


def _hbm_gather_kernel(idx_ref, table_hbm, out_ref, sem):
    """Slow path: row gather via HBM DMAs, one shared DMA semaphore."""
    i = pl.program_id(0)
    tb = out_ref.shape[0]
    num_rows = table_hbm.shape[0]
    base = i * tb

    def start_row(b):
        row = _clamp_row(idx_ref[base + b], num_rows)
        pltpu.make_async_copy(
            table_hbm.at[pl.ds(row, 1), :],   # one (1, emb_dim) HBM row
            out_ref.at[pl.ds(b, 1), :],       # straight into the output tile
            sem,                              # shared completion semaphore
        ).start()

    def wait_row(b):
        # Same dst shape as every started copy, so the decrement amount
        # matches; by the end of the loop all tb copies have completed.
        pltpu.make_async_copy(
            table_hbm.at[pl.ds(0, 1), :],
            out_ref.at[pl.ds(b, 1), :],
            sem,
        ).wait()

    if tb <= _STATIC_UNROLL_MAX:
        for b in range(tb):                   # start all (max DMAs in flight)
            start_row(b)
        for b in range(tb):                   # then drain
            wait_row(b)
    else:
        def start_body(b, carry):
            start_row(b)
            return carry

        def wait_body(b, carry):
            wait_row(b)
            return carry

        lax.fori_loop(0, tb, start_body, 0, unroll=8)
        lax.fori_loop(0, tb, wait_body, 0, unroll=8)


def _pick_tb(batch, row_bytes):
    """Largest batch tile whose output block fits the per-step VMEM budget."""
    cap = max(8, _VMEM_TILE_BUDGET // max(row_bytes, 1))
    if batch <= cap:
        return batch                          # single grid step
    best = None
    for cand in range(min(cap, batch), 7, -1):
        if batch % cand == 0 and cand % 8 == 0:
            best = cand
            break
    return best if best is not None else batch


def art_style_embedding(style_idx, table, *, tb=None):
    """Pallas equivalent of ArtStyleEmbedding.forward(style_idx)."""
    (batch,) = style_idx.shape
    num_styles, emb_dim = table.shape

    # Lane-dense layout: pad the feature dim to a multiple of 128 so every row
    # copy / output store is a full-lane, unmasked transfer.
    pad = (-emb_dim) % 128
    table_p = jnp.pad(table, ((0, 0), (0, pad))) if pad else table
    d = emb_dim + pad

    itemsize = jnp.dtype(table_p.dtype).itemsize
    row_bytes = d * itemsize
    table_bytes = num_styles * row_bytes
    use_vmem_table = table_bytes <= _VMEM_TABLE_BUDGET

    if tb is None:
        tb = _pick_tb(batch, row_bytes)
    assert batch % tb == 0, "batch must be a multiple of the batch tile"
    assert tb == batch or tb % 8 == 0, "batch tile must be a multiple of 8"

    idx = style_idx.astype(jnp.int32)
    grid = (batch // tb,)

    if use_vmem_table:
        # Table is loaded into VMEM once (constant block index) and stays
        # resident across all grid steps.
        kernel = _vmem_lookup_kernel
        table_spec = pl.BlockSpec((num_styles, d), lambda i, idx_ref: (0, 0))
        scratch = []
    else:
        # Table stays in HBM; only the selected rows are DMA'd.
        kernel = _hbm_gather_kernel
        table_spec = pl.BlockSpec(memory_space=pl.ANY)
        scratch = [pltpu.SemaphoreType.DMA(())]

    out = pl.pallas_call(
        kernel,
        out_shape=jax.ShapeDtypeStruct((batch, d), table_p.dtype),
        grid_spec=pltpu.PrefetchScalarGridSpec(
            num_scalar_prefetch=1,                    # style_idx -> SMEM
            grid=grid,
            in_specs=[table_spec],
            out_specs=pl.BlockSpec((tb, d), lambda i, idx_ref: (i, 0)),
            scratch_shapes=scratch,
        ),
        compiler_params=pltpu.CompilerParams(
            dimension_semantics=("parallel",),
        ),
    )(idx, table_p)

    if pad:
        out = out[:, :emb_dim]
    return out


if __name__ == "__main__":
    # Small, deterministic config consistent with the module.
    num_styles = 16
    embedding_dim = 128
    batch = 16

    key = jax.random.PRNGKey(0)
    k_table, k_idx = jax.random.split(key)

    # nn.Embedding(num_styles, embedding_dim).weight equivalent: N(0, 1) init.
    table = jax.random.normal(k_table, (num_styles, embedding_dim), dtype=jnp.float32)
    # style_idx: integer class indices in [0, num_styles).
    style_idx = jax.random.randint(k_idx, (batch,), 0, num_styles, dtype=jnp.int32)

    out = art_style_embedding(style_idx, table)
    out = jax.block_until_ready(out)

    ref = jnp.take(table, style_idx, axis=0)
    assert out.shape == (batch, embedding_dim)
    assert jnp.array_equal(out, ref), "Pallas embedding lookup mismatch vs reference"

    print("KERNEL_OK")
</pallas_src>

<mosaic_0001>
module attributes {stable_mosaic.version = 11 : i64} {
  func.func @_vmem_lookup_kernel(%arg0: i32, %arg1: memref<16xi32, #tpu.memory_space<smem>>, %arg2: memref<16x128xf32, #tpu.memory_space<vmem>>, %arg3: memref<16x128xf32, #tpu.memory_space<vmem>>) attributes {dimension_semantics = [#tpu.dimension_semantics<parallel>], iteration_bounds = array<i64: 1>, scalar_prefetch = 1 : i64, scratch_operands = 0 : i64, tpu.core_type = #tpu.core_type<tc>, window_params = [{pipeline_mode = #tpu.pipeline_mode<synchronous>, transform_indices = @transform_0, window_bounds = array<i64: 16, 128>}, {transform_indices = @transform_1, window_bounds = array<i64: 16, 128>}]} {
    %c16_i32 = arith.constant 16 : i32
    %0 = arith.muli %arg0, %c16_i32 : i32
    %c0_i32 = arith.constant 0 : i32
    %1 = arith.addi %0, %c0_i32 : i32
    %2 = arith.index_cast %1 : i32 to index
    %3 = memref.load %arg1[%2] : memref<16xi32, #tpu.memory_space<smem>>
    %c0_i32_0 = arith.constant 0 : i32
    %4 = arith.maxsi %3, %c0_i32_0 : i32
    %c15_i32 = arith.constant 15 : i32
    %5 = arith.minsi %4, %c15_i32 : i32
    %6 = arith.index_cast %5 : i32 to index
    %c0 = arith.constant 0 : index
    %7 = vector.load %arg2[%6, %c0] : memref<16x128xf32, #tpu.memory_space<vmem>>, vector<1x128xf32>
    %c0_1 = arith.constant 0 : index
    %c0_2 = arith.constant 0 : index
    %8 = vector.load %arg3[%c0_1, %c0_2] : memref<16x128xf32, #tpu.memory_space<vmem>>, vector<1x128xf32>
    tpu.vector_store %arg3[%c0_1, %c0_2], %7 {strides = array<i32>} : memref<16x128xf32, #tpu.memory_space<vmem>>, vector<1x128xf32>,
    %c1_i32 = arith.constant 1 : i32
    %9 = arith.addi %0, %c1_i32 : i32
    %10 = arith.index_cast %9 : i32 to index
    %11 = memref.load %arg1[%10] : memref<16xi32, #tpu.memory_space<smem>>
    %c0_i32_3 = arith.constant 0 : i32
    %12 = arith.maxsi %11, %c0_i32_3 : i32
    %c15_i32_4 = arith.constant 15 : i32
    %13 = arith.minsi %12, %c15_i32_4 : i32
    %14 = arith.index_cast %13 : i32 to index
    %c0_5 = arith.constant 0 : index
    %15 = vector.load %arg2[%14, %c0_5] : memref<16x128xf32, #tpu.memory_space<vmem>>, vector<1x128xf32>
    %c1 = arith.constant 1 : index
    %c0_6 = arith.constant 0 : index
    %16 = vector.load %arg3[%c1, %c0_6] : memref<16x128xf32, #tpu.memory_space<vmem>>, vector<1x128xf32>
    tpu.vector_store %arg3[%c1, %c0_6], %15 {strides = array<i32>} : memref<16x128xf32, #tpu.memory_space<vmem>>, vector<1x128xf32>,
    %c2_i32 = arith.constant 2 : i32
    %17 = arith.addi %0, %c2_i32 : i32
    %18 = arith.index_cast %17 : i32 to index
    %19 = memref.load %arg1[%18] : memref<16xi32, #tpu.memory_space<smem>>
    %c0_i32_7 = arith.constant 0 : i32
    %20 = arith.maxsi %19, %c0_i32_7 : i32
    %c15_i32_8 = arith.constant 15 : i32
    %21 = arith.minsi %20, %c15_i32_8 : i32
    %22 = arith.index_cast %21 : i32 to index
    %c0_9 = arith.constant 0 : index
    %23 = vector.load %arg2[%22, %c0_9] : memref<16x128xf32, #tpu.memory_space<vmem>>, vector<1x128xf32>
    %c2 = arith.constant 2 : index
    %c0_10 = arith.constant 0 : index
    %24 = vector.load %arg3[%c2, %c0_10] : memref<16x128xf32, #tpu.memory_space<vmem>>, vector<1x128xf32>
    tpu.vector_store %arg3[%c2, %c0_10], %23 {strides = array<i32>} : memref<16x128xf32, #tpu.memory_space<vmem>>, vector<1x128xf32>,
    %c3_i32 = arith.constant 3 : i32
    %25 = arith.addi %0, %c3_i32 : i32
    %26 = arith.index_cast %25 : i32 to index
    %27 = memref.load %arg1[%26] : memref<16xi32, #tpu.memory_space<smem>>
    %c0_i32_11 = arith.constant 0 : i32
    %28 = arith.maxsi %27, %c0_i32_11 : i32
    %c15_i32_12 = arith.constant 15 : i32
    %29 = arith.minsi %28, %c15_i32_12 : i32
    %30 = arith.index_cast %29 : i32 to index
    %c0_13 = arith.constant 0 : index
    %31 = vector.load %arg2[%30, %c0_13] : memref<16x128xf32, #tpu.memory_space<vmem>>, vector<1x128xf32>
    %c3 = arith.constant 3 : index
    %c0_14 = arith.constant 0 : index
    %32 = vector.load %arg3[%c3, %c0_14] : memref<16x128xf32, #tpu.memory_space<vmem>>, vector<1x128xf32>
    tpu.vector_store %arg3[%c3, %c0_14], %31 {strides = array<i32>} : memref<16x128xf32, #tpu.memory_space<vmem>>, vector<1x128xf32>,
    %c4_i32 = arith.constant 4 : i32
    %33 = arith.addi %0, %c4_i32 : i32
    %34 = arith.index_cast %33 : i32 to index
    %35 = memref.load %arg1[%34] : memref<16xi32, #tpu.memory_space<smem>>
    %c0_i32_15 = arith.constant 0 : i32
    %36 = arith.maxsi %35, %c0_i32_15 : i32
    %c15_i32_16 = arith.constant 15 : i32
    %37 = arith.minsi %36, %c15_i32_16 : i32
    %38 = arith.index_cast %37 : i32 to index
    %c0_17 = arith.constant 0 : index
    %39 = vector.load %arg2[%38, %c0_17] : memref<16x128xf32, #tpu.memory_space<vmem>>, vector<1x128xf32>
    %c4 = arith.constant 4 : index
    %c0_18 = arith.constant 0 : index
    %40 = vector.load %arg3[%c4, %c0_18] : memref<16x128xf32, #tpu.memory_space<vmem>>, vector<1x128xf32>
    tpu.vector_store %arg3[%c4, %c0_18], %39 {strides = array<i32>} : memref<16x128xf32, #tpu.memory_space<vmem>>, vector<1x128xf32>,
    %c5_i32 = arith.constant 5 : i32
    %41 = arith.addi %0, %c5_i32 : i32
    %42 = arith.index_cast %41 : i32 to index
    %43 = memref.load %arg1[%42] : memref<16xi32, #tpu.memory_space<smem>>
    %c0_i32_19 = arith.constant 0 : i32
    %44 = arith.maxsi %43, %c0_i32_19 : i32
    %c15_i32_20 = arith.constant 15 : i32
    %45 = arith.minsi %44, %c15_i32_20 : i32
    %46 = arith.index_cast %45 : i32 to index
    %c0_21 = arith.constant 0 : index
    %47 = vector.load %arg2[%46, %c0_21] : memref<16x128xf32, #tpu.memory_space<vmem>>, vector<1x128xf32>
    %c5 = arith.constant 5 : index
    %c0_22 = arith.constant 0 : index
    %48 = vector.load %arg3[%c5, %c0_22] : memref<16x128xf32, #tpu.memory_space<vmem>>, vector<1x128xf32>
    tpu.vector_store %arg3[%c5, %c0_22], %47 {strides = array<i32>} : memref<16x128xf32, #tpu.memory_space<vmem>>, vector<1x128xf32>,
    %c6_i32 = arith.constant 6 : i32
    %49 = arith.addi %0, %c6_i32 : i32
    %50 = arith.index_cast %49 : i32 to index
    %51 = memref.load %arg1[%50] : memref<16xi32, #tpu.memory_space<smem>>
    %c0_i32_23 = arith.constant 0 : i32
    %52 = arith.maxsi %51, %c0_i32_23 : i32
    %c15_i32_24 = arith.constant 15 : i32
    %53 = arith.minsi %52, %c15_i32_24 : i32
    %54 = arith.index_cast %53 : i32 to index
    %c0_25 = arith.constant 0 : index
    %55 = vector.load %arg2[%54, %c0_25] : memref<16x128xf32, #tpu.memory_space<vmem>>, vector<1x128xf32>
    %c6 = arith.constant 6 : index
    %c0_26 = arith.constant 0 : index
    %56 = vector.load %arg3[%c6, %c0_26] : memref<16x128xf32, #tpu.memory_space<vmem>>, vector<1x128xf32>
    tpu.vector_store %arg3[%c6, %c0_26], %55 {strides = array<i32>} : memref<16x128xf32, #tpu.memory_space<vmem>>, vector<1x128xf32>,
    %c7_i32 = arith.constant 7 : i32
    %57 = arith.addi %0, %c7_i32 : i32
    %58 = arith.index_cast %57 : i32 to index
    %59 = memref.load %arg1[%58] : memref<16xi32, #tpu.memory_space<smem>>
    %c0_i32_27 = arith.constant 0 : i32
    %60 = arith.maxsi %59, %c0_i32_27 : i32
    %c15_i32_28 = arith.constant 15 : i32
    %61 = arith.minsi %60, %c15_i32_28 : i32
    %62 = arith.index_cast %61 : i32 to index
    %c0_29 = arith.constant 0 : index
    %63 = vector.load %arg2[%62, %c0_29] : memref<16x128xf32, #tpu.memory_space<vmem>>, vector<1x128xf32>
    %c7 = arith.constant 7 : index
    %c0_30 = arith.constant 0 : index
    %64 = vector.load %arg3[%c7, %c0_30] : memref<16x128xf32, #tpu.memory_space<vmem>>, vector<1x128xf32>
    tpu.vector_store %arg3[%c7, %c0_30], %63 {strides = array<i32>} : memref<16x128xf32, #tpu.memory_space<vmem>>, vector<1x128xf32>,
    %c8_i32 = arith.constant 8 : i32
    %65 = arith.addi %0, %c8_i32 : i32
    %66 = arith.index_cast %65 : i32 to index
    %67 = memref.load %arg1[%66] : memref<16xi32, #tpu.memory_space<smem>>
    %c0_i32_31 = arith.constant 0 : i32
    %68 = arith.maxsi %67, %c0_i32_31 : i32
    %c15_i32_32 = arith.constant 15 : i32
    %69 = arith.minsi %68, %c15_i32_32 : i32
    %70 = arith.index_cast %69 : i32 to index
    %c0_33 = arith.constant 0 : index
    %71 = vector.load %arg2[%70, %c0_33] : memref<16x128xf32, #tpu.memory_space<vmem>>, vector<1x128xf32>
    %c8 = arith.constant 8 : index
    %c0_34 = arith.constant 0 : index
    %72 = vector.load %arg3[%c8, %c0_34] : memref<16x128xf32, #tpu.memory_space<vmem>>, vector<1x128xf32>
    tpu.vector_store %arg3[%c8, %c0_34], %71 {strides = array<i32>} : memref<16x128xf32, #tpu.memory_space<vmem>>, vector<1x128xf32>,
    %c9_i32 = arith.constant 9 : i32
    %73 = arith.addi %0, %c9_i32 : i32
    %74 = arith.index_cast %73 : i32 to index
    %75 = memref.load %arg1[%74] : memref<16xi32, #tpu.memory_space<smem>>
    %c0_i32_35 = arith.constant 0 : i32
    %76 = arith.maxsi %75, %c0_i32_35 : i32
    %c15_i32_36 = arith.constant 15 : i32
    %77 = arith.minsi %76, %c15_i32_36 : i32
    %78 = arith.index_cast %77 : i32 to index
    %c0_37 = arith.constant 0 : index
    %79 = vector.load %arg2[%78, %c0_37] : memref<16x128xf32, #tpu.memory_space<vmem>>, vector<1x128xf32>
    %c9 = arith.constant 9 : index
    %c0_38 = arith.constant 0 : index
    %80 = vector.load %arg3[%c9, %c0_38] : memref<16x128xf32, #tpu.memory_space<vmem>>, vector<1x128xf32>
    tpu.vector_store %arg3[%c9, %c0_38], %79 {strides = array<i32>} : memref<16x128xf32, #tpu.memory_space<vmem>>, vector<1x128xf32>,
    %c10_i32 = arith.constant 10 : i32
    %81 = arith.addi %0, %c10_i32 : i32
    %82 = arith.index_cast %81 : i32 to index
    %83 = memref.load %arg1[%82] : memref<16xi32, #tpu.memory_space<smem>>
    %c0_i32_39 = arith.constant 0 : i32
    %84 = arith.maxsi %83, %c0_i32_39 : i32
    %c15_i32_40 = arith.constant 15 : i32
    %85 = arith.minsi %84, %c15_i32_40 : i32
    %86 = arith.index_cast %85 : i32 to index
    %c0_41 = arith.constant 0 : index
    %87 = vector.load %arg2[%86, %c0_41] : memref<16x128xf32, #tpu.memory_space<vmem>>, vector<1x128xf32>
    %c10 = arith.constant 10 : index
    %c0_42 = arith.constant 0 : index
    %88 = vector.load %arg3[%c10, %c0_42] : memref<16x128xf32, #tpu.memory_space<vmem>>, vector<1x128xf32>
    tpu.vector_store %arg3[%c10, %c0_42], %87 {strides = array<i32>} : memref<16x128xf32, #tpu.memory_space<vmem>>, vector<1x128xf32>,
    %c11_i32 = arith.constant 11 : i32
    %89 = arith.addi %0, %c11_i32 : i32
    %90 = arith.index_cast %89 : i32 to index
    %91 = memref.load %arg1[%90] : memref<16xi32, #tpu.memory_space<smem>>
    %c0_i32_43 = arith.constant 0 : i32
    %92 = arith.maxsi %91, %c0_i32_43 : i32
    %c15_i32_44 = arith.constant 15 : i32
    %93 = arith.minsi %92, %c15_i32_44 : i32
    %94 = arith.index_cast %93 : i32 to index
    %c0_45 = arith.constant 0 : index
    %95 = vector.load %arg2[%94, %c0_45] : memref<16x128xf32, #tpu.memory_space<vmem>>, vector<1x128xf32>
    %c11 = arith.constant 11 : index
    %c0_46 = arith.constant 0 : index
    %96 = vector.load %arg3[%c11, %c0_46] : memref<16x128xf32, #tpu.memory_space<vmem>>, vector<1x128xf32>
    tpu.vector_store %arg3[%c11, %c0_46], %95 {strides = array<i32>} : memref<16x128xf32, #tpu.memory_space<vmem>>, vector<1x128xf32>,
    %c12_i32 = arith.constant 12 : i32
    %97 = arith.addi %0, %c12_i32 : i32
    %98 = arith.index_cast %97 : i32 to index
    %99 = memref.load %arg1[%98] : memref<16xi32, #tpu.memory_space<smem>>
    %c0_i32_47 = arith.constant 0 : i32
    %100 = arith.maxsi %99, %c0_i32_47 : i32
    %c15_i32_48 = arith.constant 15 : i32
    %101 = arith.minsi %100, %c15_i32_48 : i32
    %102 = arith.index_cast %101 : i32 to index
    %c0_49 = arith.constant 0 : index
    %103 = vector.load %arg2[%102, %c0_49] : memref<16x128xf32, #tpu.memory_space<vmem>>, vector<1x128xf32>
    %c12 = arith.constant 12 : index
    %c0_50 = arith.constant 0 : index
    %104 = vector.load %arg3[%c12, %c0_50] : memref<16x128xf32, #tpu.memory_space<vmem>>, vector<1x128xf32>
    tpu.vector_store %arg3[%c12, %c0_50], %103 {strides = array<i32>} : memref<16x128xf32, #tpu.memory_space<vmem>>, vector<1x128xf32>,
    %c13_i32 = arith.constant 13 : i32
    %105 = arith.addi %0, %c13_i32 : i32
    %106 = arith.index_cast %105 : i32 to index
    %107 = memref.load %arg1[%106] : memref<16xi32, #tpu.memory_space<smem>>
    %c0_i32_51 = arith.constant 0 : i32
    %108 = arith.maxsi %107, %c0_i32_51 : i32
    %c15_i32_52 = arith.constant 15 : i32
    %109 = arith.minsi %108, %c15_i32_52 : i32
    %110 = arith.index_cast %109 : i32 to index
    %c0_53 = arith.constant 0 : index
    %111 = vector.load %arg2[%110, %c0_53] : memref<16x128xf32, #tpu.memory_space<vmem>>, vector<1x128xf32>
    %c13 = arith.constant 13 : index
    %c0_54 = arith.constant 0 : index
    %112 = vector.load %arg3[%c13, %c0_54] : memref<16x128xf32, #tpu.memory_space<vmem>>, vector<1x128xf32>
    tpu.vector_store %arg3[%c13, %c0_54], %111 {strides = array<i32>} : memref<16x128xf32, #tpu.memory_space<vmem>>, vector<1x128xf32>,
    %c14_i32 = arith.constant 14 : i32
    %113 = arith.addi %0, %c14_i32 : i32
    %114 = arith.index_cast %113 : i32 to index
    %115 = memref.load %arg1[%114] : memref<16xi32, #tpu.memory_space<smem>>
    %c0_i32_55 = arith.constant 0 : i32
    %116 = arith.maxsi %115, %c0_i32_55 : i32
    %c15_i32_56 = arith.constant 15 : i32
    %117 = arith.minsi %116, %c15_i32_56 : i32
    %118 = arith.index_cast %117 : i32 to index
    %c0_57 = arith.constant 0 : index
    %119 = vector.load %arg2[%118, %c0_57] : memref<16x128xf32, #tpu.memory_space<vmem>>, vector<1x128xf32>
    %c14 = arith.constant 14 : index
    %c0_58 = arith.constant 0 : index
    %120 = vector.load %arg3[%c14, %c0_58] : memref<16x128xf32, #tpu.memory_space<vmem>>, vector<1x128xf32>
    tpu.vector_store %arg3[%c14, %c0_58], %119 {strides = array<i32>} : memref<16x128xf32, #tpu.memory_space<vmem>>, vector<1x128xf32>,
    %c15_i32_59 = arith.constant 15 : i32
    %121 = arith.addi %0, %c15_i32_59 : i32
    %122 = arith.index_cast %121 : i32 to index
    %123 = memref.load %arg1[%122] : memref<16xi32, #tpu.memory_space<smem>>
    %c0_i32_60 = arith.constant 0 : i32
    %124 = arith.maxsi %123, %c0_i32_60 : i32
    %c15_i32_61 = arith.constant 15 : i32
    %125 = arith.minsi %124, %c15_i32_61 : i32
    %126 = arith.index_cast %125 : i32 to index
    %c0_62 = arith.constant 0 : index
    %127 = vector.load %arg2[%126, %c0_62] : memref<16x128xf32, #tpu.memory_space<vmem>>, vector<1x128xf32>
    %c15 = arith.constant 15 : index
    %c0_63 = arith.constant 0 : index
    %128 = vector.load %arg3[%c15, %c0_63] : memref<16x128xf32, #tpu.memory_space<vmem>>, vector<1x128xf32>
    tpu.vector_store %arg3[%c15, %c0_63], %127 {strides = array<i32>} : memref<16x128xf32, #tpu.memory_space<vmem>>, vector<1x128xf32>,
    return
  }
  func.func @transform_0(%arg0: i32, %arg1: memref<16xi32, #tpu.memory_space<smem>>) -> (i32, i32) {
    %c0_i32 = arith.constant 0 : i32
    %c0_i32_0 = arith.constant 0 : i32
    %c0_i32_1 = arith.constant 0 : i32
    return %c0_i32, %c0_i32_0 : i32, i32
  }
  func.func @transform_1(%arg0: i32, %arg1: memref<16xi32, #tpu.memory_space<smem>>) -> (i32, i32) {
    %c0_i32 = arith.constant 0 : i32
    %c0_i32_0 = arith.constant 0 : i32
    return %arg0, %c0_i32 : i32, i32
  }
}

</mosaic_0001>

<bundles_post_ra>
// kernel: tpu_custom_call.1
= control target key start
LH: loop header
LB: loop body
LE: loop exit
PB: predicated region body
PF: predicated region fallthrough
CT: control target
= control target key end

     0   :  { %s509_s0 = inlined_call_operand.hbm [shape: s32[16], index: 0, kind: input, shape index: {}]   ;;  %s510_s1 = inlined_call_operand.hbm [shape: f32[16,128], index: 1, kind: input, shape index: {}]   ;;  %s511_s2 = inlined_call_operand.hbm [shape: f32[16,128], index: 2, kind: output, shape index: {}]  }
   0x1   :  { %s337_s11 = scalar_lea.hbm %s509_s0, 16 }
   0x2   :  { %p338_p0 = scmp.ne.s32.totalorder %s509_s0, %s337_s11  ;;  %p341_p1 = scmp.lt.u32.totalorder %s337_s11, %s509_s0 }
   0x4   :  { %p343_p2 = pnand %p341_p1, %p338_p0 }
   0x6   :  { %346 = shalt.err (!%p343_p2)  }
   0x7   :  { %s397_s16 = smov [#allocation3]  }
   0x8   :  { %8 = dma.hbm_to_smem %s509_s0, 16, %s397_s16, [#allocation2] }
   0x9   :  { %391 = dma.done.wait [#allocation2], 16 }
   0xa   :  { %392 = vsyncadd [#allocation2], 4294967280 }
   0xb   :  { %10 = sfence }
   0xc   :  { %11 = vsyncpa [#allocation5], 0 }
   0xd   :  { %12 = vsyncpa [#allocation6], 0  ;;  %s398_s19 = smov [#allocation4]   ;;  %s347_s23 = scalar_lea.hbm %s510_s1, 256 }
   0xe   :  { %s18_s20 = sshll.u32 %s398_s19, 4  ;;  %p348_p3 = scmp.ne.s32.totalorder %s510_s1, %s347_s23  ;;  %s19_s20 = int_to_ptr.vmem [resolvable:$true] %s18_s20 }
   0xf   :  { %p351_p4 = scmp.lt.u32.totalorder %s347_s23, %s510_s1 }
  0x11   :  { %p353_p5 = pnand %p351_p4, %p348_p3 }
  0x13   :  { %356 = shalt.err (!%p353_p5)
}
  0x14   :  { %s357_s0 = scalar_lea.vmem %s19_s20, 256  ;;  %p362_p7 = scmp.lt.s32.totalorder %s19_s20, %s19_s20 }
  0x15   :  { %p358_p6 = scmp.ne.s32.totalorder %s19_s20, %s357_s0  ;;  %p363_p8 = scmp.lt.s32.totalorder %s357_s0, %s357_s0 }
  0x17   :  { %p364_p9 = por %p363_p8, %p362_p7 }
  0x19   :  { %p365_p10 = pnand %p364_p9, %p358_p6 }
  0x1b   :  { %368 = shalt.err (!%p365_p10)
}
  0x1c   :  { %s399_s28 = smov 128   ;;  %s400_s29 = smov 8  }
  0x1d   :  { %24 = dma.hbm_to_vmem [thread:$0]  %s510_s1, 256, %s19_s20, [#allocation5], %s399_s28, %s399_s28, %s400_s29  }
  0x1e   :  { %393 = dma.done.wait [#allocation5], 256  }
  0x1f   :  { %394 = vsyncadd [#allocation5], 4294967040  ;;  %s29_s4 = sld [smem:[#allocation3]]  ;;  %s210_s5 = sld [smem:[#allocation3 + $0x1]] }
  0x20   :  { %s444_s6 = sld [smem:[#allocation3 + $0x2]]  ;;  %s446_s7 = sld [smem:[#allocation3 + $0x3]] }
  0x21   :  { %s448_s8 = sld [smem:[#allocation3 + $0x4]]  ;;  %s450_s9 = sld [smem:[#allocation3 + $0x5]] }
  0x22   :  { %s452_s10 = sld [smem:[#allocation3 + $0x6]]  ;;  %s454_s11 = sld [smem:[#allocation3 + $0x7]] }
  0x23   :  { %s456_s12 = sld [smem:[#allocation3 + $0x8]]  ;;  %s458_s1 = sld [smem:[#allocation3 + $0x9]] }
  0x24   :  { %s460_s13 = sld [smem:[#allocation3 + $0xa]]  ;;  %s462_s14 = sld [smem:[#allocation3 + $0xb]] }
  0x25   :  { %p30_p11 = scmp.gt.s32.totalorder %s29_s4, 0  ;;  %p205_p12 = scmp.lt.s32.totalorder %s29_s4, 15 }
  0x26   :  { %p39_p13 = scmp.gt.s32.totalorder %s210_s5, 0  ;;  %p211_p0 = scmp.lt.s32.totalorder %s210_s5, 15 }
  0x27   :  { %s513_s4 = smov (!%p30_p11, %s29_s4), 0  ;;  %p48_p1 = scmp.gt.s32.totalorder %s444_s6, 0 }
  0x28   :  { %s515_s5 = smov (!%p39_p13, %s210_s5), 0  ;;  %s517_s4 = smov (!%p205_p12, %s513_s4), 15 }
  0x29   :  { %s519_s5 = smov (!%p211_p0, %s515_s5), 15  ;;  %s34_s15 = scalar_lea.vmem [#allocation4], %s517_s4 }
  0x2a   :  { %v35_v0 = vld [vmem:[%s34_s15] sm:$0x1]  ;;  %p217_p2 = scmp.lt.s32.totalorder %s444_s6, 15  ;;  %s43_s16 = scalar_lea.vmem [#allocation4], %s519_s5 }
  0x2b   :  { %36 = vst [vmem:[#allocation7] sm:$0x1] %v35_v0  ;;  %v44_v1 = vld [vmem:[%s43_s16] sm:$0x1]  ;;  %s521_s6 = smov (!%p48_p1, %s444_s6), 0  ;;  %p57_p3 = scmp.gt.s32.totalorder %s446_s7, 0 }
  0x2c   :  { %45 = vst [vmem:[#allocation7 + $0x1] sm:$0x1] %v44_v1  ;;  %p223_p4 = scmp.lt.s32.totalorder %s446_s7, 15  ;;  %s523_s6 = smov (!%p217_p2, %s521_s6), 15 }
  0x2d   :  { %s525_s7 = smov (!%p57_p3, %s446_s7), 0  ;;  %p66_p5 = scmp.gt.s32.totalorder %s448_s8, 0 }
  0x2e   :  { %s52_s17 = scalar_lea.vmem [#allocation4], %s523_s6  ;;  %s527_s7 = smov (!%p223_p4, %s525_s7), 15 }
  0x2f   :  { %v53_v2 = vld [vmem:[%s52_s17] sm:$0x1]  ;;  %s67_s18 = scalar_select %p66_p5, %s448_s8, 0 }
  0x30   :  { %54 = vst [vmem:[#allocation7 + $0x2] sm:$0x1] %v53_v2  ;;  %p229_p6 = scmp.lt.s32.totalorder %s448_s8, 15  ;;  %s61_s19 = scalar_lea.vmem [#allocation4], %s527_s7 }
  0x31   :  { %v62_v3 = vld [vmem:[%s61_s19] sm:$0x1]  ;;  %p75_p7 = scmp.gt.s32.totalorder %s450_s9, 0  ;;  %p235_p8 = scmp.lt.s32.totalorder %s450_s9, 15 }
  0x32   :  { %63 = vst [vmem:[#allocation7 + $0x3] sm:$0x1] %v62_v3  ;;  %s529_s18 = smov (!%p229_p6, %s67_s18), 15  ;;  %p84_p9 = scmp.gt.s32.totalorder %s452_s10, 0 }
  0x33   :  { %s531_s9 = smov (!%p75_p7, %s450_s9), 0  ;;  %s70_s20 = scalar_lea.vmem [#allocation4], %s529_s18 }
  0x34   :  { %v71_v4 = vld [vmem:[%s70_s20] sm:$0x1]  ;;  %s533_s9 = smov (!%p235_p8, %s531_s9), 15  ;;  %p241_p10 = scmp.lt.s32.totalorder %s452_s10, 15 }
  0x35   :  { %72 = vst [vmem:[#allocation7 + $0x4] sm:$0x1] %v71_v4  ;;  %s85_s21 = scalar_select %p84_p9, %s452_s10, 0 }
  0x36   :  { %s79_s22 = scalar_lea.vmem [#allocation4], %s533_s9  ;;  %p93_p11 = scmp.gt.s32.totalorder %s454_s11, 0 }
  0x37   :  { %v80_v5 = vld [vmem:[%s79_s22] sm:$0x1]  ;;  %p247_p12 = scmp.lt.s32.totalorder %s454_s11, 15  ;;  %s535_s21 = smov (!%p241_p10, %s85_s21), 15 }
  0x38   :  { %81 = vst [vmem:[#allocation7 + $0x5] sm:$0x1] %v80_v5  ;;  %s537_s11 = smov (!%p93_p11, %s454_s11), 0  ;;  %p102_p13 = scmp.gt.s32.totalorder %s456_s12, 0 }
  0x39   :  { %s88_s23 = scalar_lea.vmem [#allocation4], %s535_s21  ;;  %s539_s11 = smov (!%p247_p12, %s537_s11), 15 }
  0x3a   :  { %v89_v6 = vld [vmem:[%s88_s23] sm:$0x1]  ;;  %s103_s24 = scalar_select %p102_p13, %s456_s12, 0 }
  0x3b   :  { %90 = vst [vmem:[#allocation7 + $0x6] sm:$0x1] %v89_v6  ;;  %p253_p0 = scmp.lt.s32.totalorder %s456_s12, 15  ;;  %s97_s25 = scalar_lea.vmem [#allocation4], %s539_s11 }
  0x3c   :  { %v98_v7 = vld [vmem:[%s97_s25] sm:$0x1]  ;;  %p111_p1 = scmp.gt.s32.totalorder %s458_s1, 0  ;;  %p259_p2 = scmp.lt.s32.totalorder %s458_s1, 15 }
  0x3d   :  { %99 = vst [vmem:[#allocation7 + $0x7] sm:$0x1] %v98_v7  ;;  %s541_s24 = smov (!%p253_p0, %s103_s24), 15  ;;  %p120_p3 = scmp.gt.s32.totalorder %s460_s13, 0 }
  0x3e   :  { %s543_s1 = smov (!%p111_p1, %s458_s1), 0  ;;  %s106_s26 = scalar_lea.vmem [#allocation4], %s541_s24 }
  0x3f   :  { %v107_v8 = vld [vmem:[%s106_s26] sm:$0x1]  ;;  %s545_s1 = smov (!%p259_p2, %s543_s1), 15  ;;  %p265_p4 = scmp.lt.s32.totalorder %s460_s13, 15 }
  0x40   :  { %108 = vst [vmem:[#allocation7 + $0x8] sm:$0x1] %v107_v8  ;;  %s121_s27 = scalar_select %p120_p3, %s460_s13, 0 }
  0x41   :  { %s115_s0 = scalar_lea.vmem [#allocation4], %s545_s1  ;;  %p129_p5 = scmp.gt.s32.totalorder %s462_s14, 0 }
  0x42   :  { %v116_v9 = vld [vmem:[%s115_s0] sm:$0x1]  ;;  %p271_p6 = scmp.lt.s32.totalorder %s462_s14, 15  ;;  %s547_s27 = smov (!%p265_p4, %s121_s27), 15 }
  0x43   :  { %117 = vst [vmem:[#allocation7 + $0x9] sm:$0x1] %v116_v9  ;;  %s549_s14 = smov (!%p129_p5, %s462_s14), 0  ;;  %s276_s30 = sld [smem:[#allocation3 + $0xc]] }
  0x44   :  { %s124_s3 = scalar_lea.vmem [#allocation4], %s547_s27  ;;  %s551_s14 = smov (!%p271_p6, %s549_s14), 15 }
  0x45   :  { %v125_v10 = vld [vmem:[%s124_s3] sm:$0x1]  ;;  %s282_s4 = sld [smem:[#allocation3 + $0xd]]  ;;  %s133_s5 = scalar_lea.vmem [#allocation4], %s551_s14 }
  0x46   :  { %126 = vst [vmem:[#allocation7 + $0xa] sm:$0x1] %v125_v10  ;;  %v134_v11 = vld [vmem:[%s133_s5] sm:$0x1]  ;;  %s288_s6 = sld [smem:[#allocation3 + $0xe]]  ;;  %s294_s7 = sld [smem:[#allocation3 + $0xf]] }
  0x47   :  { %135 = vst [vmem:[#allocation7 + $0xb] sm:$0x1] %v134_v11  ;;  %s401_s11 = smov [#allocation7]  }
  0x48   :  { %s177_s12 = sshll.u32 %s401_s11, 4  ;;  %s178_s12 = int_to_ptr.vmem [resolvable:$true] %s177_s12 }
  0x49   :  { %p138_p7 = scmp.gt.s32.totalorder %s276_s30, 0  ;;  %p277_p8 = scmp.lt.s32.totalorder %s276_s30, 15 }
  0x4a   :  { %s369_s14 = scalar_lea.vmem %s178_s12, 256  ;;  %p374_p2 = scmp.lt.s32.totalorder %s178_s12, %s178_s12 }
  0x4b   :  { %s553_s30 = smov (!%p138_p7, %s276_s30), 0  ;;  %p147_p9 = scmp.gt.s32.totalorder %s282_s4, 0 }
  0x4c   :  { %p283_p10 = scmp.lt.s32.totalorder %s282_s4, 15  ;;  %s555_s30 = smov (!%p277_p8, %s553_s30), 15 }
  0x4d   :  { %s557_s4 = smov (!%p147_p9, %s282_s4), 0  ;;  %p156_p11 = scmp.gt.s32.totalorder %s288_s6, 0 }
  0x4e   :  { %s142_s8 = scalar_lea.vmem [#allocation4], %s555_s30  ;;  %s559_s4 = smov (!%p283_p10, %s557_s4), 15 }
  0x4f   :  { %v143_v12 = vld [vmem:[%s142_s8] sm:$0x1]  ;;  %s157_s9 = scalar_select %p156_p11, %s288_s6, 0 }
  0x50   :  { %144 = vst [vmem:[#allocation7 + $0xc] sm:$0x1] %v143_v12  ;;  %p289_p12 = scmp.lt.s32.totalorder %s288_s6, 15  ;;  %s151_s10 = scalar_lea.vmem [#allocation4], %s559_s4 }
  0x51   :  { %v152_v13 = vld [vmem:[%s151_s10] sm:$0x1]  ;;  %p165_p13 = scmp.gt.s32.totalorder %s294_s7, 0  ;;  %p295_p0 = scmp.lt.s32.totalorder %s294_s7, 15 }
  0x52   :  { %153 = vst [vmem:[#allocation7 + $0xd] sm:$0x1] %v152_v13  ;;  %s561_s9 = smov (!%p289_p12, %s157_s9), 15  ;;  %p370_p1 = scmp.ne.s32.totalorder %s178_s12, %s369_s14 }
  0x53   :  { %s563_s7 = smov (!%p165_p13, %s294_s7), 0  ;;  %s160_s1 = scalar_lea.vmem [#allocation4], %s561_s9 }
  0x54   :  { %v161_v14 = vld [vmem:[%s160_s1] sm:$0x1]  ;;  %s565_s7 = smov (!%p295_p0, %s563_s7), 15  ;;  %p375_p3 = scmp.lt.s32.totalorder %s369_s14, %s369_s14 }
  0x55   :  { %162 = vst [vmem:[#allocation7 + $0xe] sm:$0x1] %v161_v14  ;;  %s169_s13 = scalar_lea.vmem [#allocation4], %s565_s7 }
  0x56   :  { %v170_v15 = vld [vmem:[%s169_s13] sm:$0x1]  ;;  %p376_p4 = por %p375_p3, %p374_p2 }
  0x57   :  { %171 = vst [vmem:[#allocation7 + $0xf] sm:$0x1] %v170_v15 }
  0x58   :  { %p377_p5 = pnand %p376_p4, %p370_p1 }
  0x5a   :  { %380 = shalt.err (!%p377_p5)
}
  0x5b   :  { %s381_s17 = scalar_lea.hbm %s511_s2, 256 }
  0x5c   :  { %p382_p6 = scmp.ne.s32.totalorder %s511_s2, %s381_s17  ;;  %p385_p7 = scmp.lt.u32.totalorder %s381_s17, %s511_s2 }
  0x5e   :  { %p387_p8 = pnand %p385_p7, %p382_p6 }
  0x60   :  { %390 = shalt.err (!%p387_p8)
}
  0x61   :  { %183 = dma.vmem_to_hbm [thread:$0]  %s178_s12, 256, %s511_s2, [#allocation6], %s399_s28, %s399_s28, %s400_s29  }
  0x62   :  { %395 = dma.done.wait [#allocation6], 256  }
  0x63   :  { %396 = vsyncadd [#allocation6], 4294967040 }
  0x64   :  { %187 = vsyncpa [#allocation5], 1 }
  0x65   :  { %188 = vsyncpa [#allocation6], 1 }

</bundles_post_ra>
